<compile_context>
chip_gen: v7x
topology: tpu7x:2x2x1
jax: 0.10.0
libtpu: 0.0.40
codegen_flags: <defaults>
</compile_context>

<pallas_src>
import functools

import jax
import jax.numpy as jnp
from jax import lax
from jax.experimental import pallas as pl
from jax.experimental.pallas import tpu as pltpu

_LANE = 128


def _sublane(dtype):
    itemsize = jnp.dtype(dtype).itemsize
    return 8 if itemsize >= 4 else (16 if itemsize == 2 else 32)


def _vmem_info():
    """Returns (live-tile budget bytes, physical VMEM bytes, capacity_known)."""
    cap = None
    try:
        cap = int(pltpu.get_tpu_info().vmem_capacity_bytes)
    except Exception:
        cap = None
    known = bool(cap) and cap > 0
    if not known:
        cap = 64 * 1024 * 1024  # conservative default: v7x per-TC VMEM
    # Keep live, double-buffered tile bytes below ~38% of physical VMEM so
    # compiler scratch / pipeline bookkeeping always have headroom.
    return int(cap * 0.38), int(cap), known


# --------------------------- fused fast path ---------------------------------


def _adain_fused_kernel(x_ref, y_ref, o_ref, *, eps, nx, ny):
    # x_ref: (row_tile, nx), y_ref: (row_tile, ny), o_ref: (row_tile, nx).
    # Two-pass statistics (mean, then centered sum of squares): the tiles are
    # resident in VMEM, so the extra pass is hidden under the HBM DMA and
    # avoids catastrophic cancellation of the one-pass form.
    x_mean = jnp.sum(x_ref[...], axis=-1, keepdims=True, dtype=jnp.float32) * (1.0 / nx)
    y_mean = jnp.sum(y_ref[...], axis=-1, keepdims=True, dtype=jnp.float32) * (1.0 / ny)
    xd = x_ref[...].astype(jnp.float32) - x_mean
    yd = y_ref[...].astype(jnp.float32) - y_mean
    # Unbiased (N-1) variance, matching torch.var(dim=-1) defaults.  nx == 1 or
    # ny == 1 yields NaN/inf, exactly like the PyTorch module.
    x_var = jnp.sum(xd * xd, axis=-1, keepdims=True) / (nx - 1.0)
    y_var = jnp.sum(yd * yd, axis=-1, keepdims=True) / (ny - 1.0)
    # Fold normalization into one per-row affine transform (one mul + one add
    # of full width; sqrt/divide run on (row_tile, 1) scalars).
    scale = jnp.sqrt((y_var + eps) / (x_var + eps))
    shift = y_mean - x_mean * scale
    # Re-stream x from the VMEM block for the apply pass (lower vreg pressure
    # than keeping an f32 copy live across the reductions).
    o_ref[...] = (x_ref[...].astype(jnp.float32) * scale + shift).astype(o_ref.dtype)


# ----------------------- spatial-chunked fallback ----------------------------


def _row_sums_kernel(x_ref, s1_ref, s2_ref, *, n, chunk):
    # grid = (row_tiles, n_chunks); x_ref: (row_tile, chunk);
    # s1/s2: (row_tile, 1) f32 accumulators (same output block across the
    # "arbitrary" chunk axis -> resident in VMEM, P3 pattern).
    j = pl.program_id(1)

    @pl.when(j == 0)
    def _init():
        s1_ref[...] = jnp.zeros_like(s1_ref)
        s2_ref[...] = jnp.zeros_like(s2_ref)

    x = x_ref[...].astype(jnp.float32)
    # The last chunk may overhang the true row length n; OOB block contents are
    # unspecified, so mask them out of the sums.
    col = j * chunk + lax.broadcasted_iota(jnp.int32, x.shape, 1)
    x = jnp.where(col < n, x, 0.0)
    s1_ref[...] += jnp.sum(x, axis=-1, keepdims=True)
    s2_ref[...] += jnp.sum(x * x, axis=-1, keepdims=True)


def _affine_apply_kernel(x_ref, scale_ref, shift_ref, o_ref):
    o_ref[...] = (
        x_ref[...].astype(jnp.float32) * scale_ref[...] + shift_ref[...]
    ).astype(o_ref.dtype)


def _row_sums(flat, n, row_tile, chunk, vmem_limit):
    rows = flat.shape[0]
    kernel = functools.partial(_row_sums_kernel, n=n, chunk=chunk)
    s1, s2 = pl.pallas_call(
        kernel,
        out_shape=(
            jax.ShapeDtypeStruct((rows, 1), jnp.float32),
            jax.ShapeDtypeStruct((rows, 1), jnp.float32),
        ),
        grid_spec=pltpu.PrefetchScalarGridSpec(
            num_scalar_prefetch=0,
            grid=(pl.cdiv(rows, row_tile), pl.cdiv(n, chunk)),
            in_specs=[pl.BlockSpec((row_tile, chunk), lambda i, j: (i, j))],
            out_specs=(
                pl.BlockSpec((row_tile, 1), lambda i, j: (i, 0)),
                pl.BlockSpec((row_tile, 1), lambda i, j: (i, 0)),
            ),
        ),
        compiler_params=pltpu.CompilerParams(
            dimension_semantics=("parallel", "arbitrary"),
            vmem_limit_bytes=vmem_limit,
        ),
    )(flat)
    return s1, s2


def _adain_chunked(x, x_flat, y_flat, rows, nx, ny, eps, sub, itemsize,
                   budget, vmem_cap):
    # Whole rows do not fit the VMEM budget: (1) accumulate per-row sum /
    # sum-of-squares over spatial chunks, (2) compute per-row scale/shift in
    # plain JAX (rows elements, trivial), (3) apply the affine transform over
    # x in lane-dense chunks.  One-pass sums are used here on purpose: a
    # two-pass variance would cost an extra full HBM read of x and y.
    row_tile = rows if rows < sub else sub
    # Chunk sized so the apply pass's double-buffered input + output blocks
    # (4 * row_tile * chunk * itemsize) stay within the budget.
    chunk = max(_LANE, (budget // (4 * row_tile * itemsize)) // _LANE * _LANE)
    cx = nx if nx <= chunk else chunk
    cy = ny if ny <= chunk else chunk

    def limit(live_bytes):
        return int(min(max(live_bytes + (8 << 20), 32 << 20), int(vmem_cap * 0.9)))

    x_s1, x_s2 = _row_sums(x_flat, nx, row_tile, cx, limit(2 * row_tile * cx * itemsize))
    y_s1, y_s2 = _row_sums(y_flat, ny, row_tile, cy, limit(2 * row_tile * cy * itemsize))

    x_mean = x_s1 / nx
    y_mean = y_s1 / ny
    x_var = (x_s2 - x_s1 * x_mean) / (nx - 1.0)
    y_var = (y_s2 - y_s1 * y_mean) / (ny - 1.0)
    scale = jnp.sqrt((y_var + eps) / (x_var + eps))  # (rows, 1) f32
    shift = y_mean - x_mean * scale                  # (rows, 1) f32

    out_flat = pl.pallas_call(
        _affine_apply_kernel,
        out_shape=jax.ShapeDtypeStruct((rows, nx), x.dtype),
        grid_spec=pltpu.PrefetchScalarGridSpec(
            num_scalar_prefetch=0,
            grid=(pl.cdiv(rows, row_tile), pl.cdiv(nx, cx)),
            in_specs=[
                pl.BlockSpec((row_tile, cx), lambda i, j: (i, j)),
                pl.BlockSpec((row_tile, 1), lambda i, j: (i, 0)),
                pl.BlockSpec((row_tile, 1), lambda i, j: (i, 0)),
            ],
            out_specs=pl.BlockSpec((row_tile, cx), lambda i, j: (i, j)),
        ),
        compiler_params=pltpu.CompilerParams(
            dimension_semantics=("parallel", "parallel"),
            vmem_limit_bytes=limit(4 * row_tile * cx * itemsize),
        ),
    )(x_flat, scale, shift)
    return out_flat.reshape(x.shape)


# --------------------------------- wrapper ------------------------------------


def adain(x, y, eps=1e-5, row_tile=None, vmem_budget_bytes=None):
    """AdaIN forward.  x: (bs, ch, H, W), y: (bs, ch, Hy, Wy) (NCHW layout)."""
    assert x.shape[0] == y.shape[0]
    bs, ch = x.shape[:2]
    assert y.shape[1] == ch

    nx = 1
    for d in x.shape[2:]:
        nx *= d
    ny = 1
    for d in y.shape[2:]:
        ny *= d
    rows = bs * ch

    # No padding / slicing: the last block dim equals the full array extent, so
    # the 128-divisibility rule does not apply and no extra HBM pass is paid.
    # TODO(synk): for tiny spatial sizes (H*W < 128) a row-folding relayout
    # would make stores lane-dense; skipped since normal images have H*W >= 128.
    x_flat = x.reshape(rows, nx)
    y_flat = y.reshape(rows, ny)

    itemsize = jnp.dtype(x.dtype).itemsize
    sub = _sublane(x.dtype)
    eps = float(eps)

    budget, vmem_cap, cap_known = _vmem_info()
    if vmem_budget_bytes is not None:
        budget = int(vmem_budget_bytes)
    # TensorCore-count heuristic: v7x (<= 64 MiB VMEM per TC) has 2 cores that
    # share the "parallel" grid axis; v5e/v6e (128 MiB) have 1.
    num_tc = 2 if (cap_known and vmem_cap <= (96 << 20)) else 1

    per_row_bytes = (2 * nx + ny) * itemsize
    min_rows = rows if rows < sub else sub

    if row_tile is None and 2 * min_rows * per_row_bytes > budget:
        # Even the smallest legal row tile blows the VMEM budget: chunk the
        # spatial axis instead.
        return _adain_chunked(x, x_flat, y_flat, rows, nx, ny, eps, sub,
                              itemsize, budget, vmem_cap)

    if row_tile is None:
        t = max(sub, (budget // (2 * per_row_bytes)) // sub * sub)
        # On 2-TC parts keep >= 8 total grid steps (>= 4 per core) when there
        # is enough work, so each core's pipeline hides its DMA.
        if num_tc >= 2 and rows >= 8 * sub:
            t = min(t, max(sub, (rows // 8) // sub * sub))
        row_tile = int(min(t, rows)) if rows >= sub else int(rows)
    else:
        # Manual override: keep it legal for the (8, 128) rule.
        row_tile = int(row_tile)
        if row_tile != rows:
            row_tile = max(sub, (row_tile // sub) * sub)
    row_tile = max(1, min(row_tile, rows))

    # Prefer an exact divisor of rows only if it keeps at least half of the
    # budget-derived tile; otherwise keep the big tile and accept one ragged
    # (masked) last row block — rows are independent.
    if rows % row_tile != 0 and row_tile % sub == 0:
        divisors = [d for d in range(sub, row_tile + 1, sub) if rows % d == 0]
        if divisors and 2 * max(divisors) >= row_tile:
            row_tile = max(divisors)

    live_bytes = 2 * row_tile * per_row_bytes
    vmem_limit = int(min(max(live_bytes + (8 << 20), 32 << 20), int(vmem_cap * 0.9)))

    kernel = functools.partial(
        _adain_fused_kernel, eps=eps, nx=float(nx), ny=float(ny)
    )
    cost = pl.CostEstimate(
        flops=int(rows * (7 * nx + 5 * ny)),
        transcendentals=int(rows),
        bytes_accessed=int(itemsize * rows * (2 * nx + ny)),
    )

    out_flat = pl.pallas_call(
        kernel,
        out_shape=jax.ShapeDtypeStruct((rows, nx), x.dtype),
        grid_spec=pltpu.PrefetchScalarGridSpec(
            num_scalar_prefetch=0,
            grid=(pl.cdiv(rows, row_tile),),
            in_specs=[
                pl.BlockSpec((row_tile, nx), lambda i: (i, 0)),
                pl.BlockSpec((row_tile, ny), lambda i: (i, 0)),
            ],
            out_specs=pl.BlockSpec((row_tile, nx), lambda i: (i, 0)),
        ),
        compiler_params=pltpu.CompilerParams(
            dimension_semantics=("parallel",),
            vmem_limit_bytes=vmem_limit,
        ),
        cost_estimate=cost,
    )(x_flat, y_flat)

    return out_flat.reshape(x.shape)


def adain_reference(x, y, eps=1e-5):
    """Pure-JAX reference matching the PyTorch module semantics."""
    bs, ch = x.shape[:2]
    x_ = x.reshape(bs, ch, -1).astype(jnp.float32)
    y_ = y.reshape(bs, ch, -1).astype(jnp.float32)
    x_std = jnp.sqrt(jnp.var(x_, axis=-1, ddof=1) + eps).reshape(bs, ch, 1, 1)
    x_mean = jnp.mean(x_, axis=-1).reshape(bs, ch, 1, 1)
    y_std = jnp.sqrt(jnp.var(y_, axis=-1, ddof=1) + eps).reshape(bs, ch, 1, 1)
    y_mean = jnp.mean(y_, axis=-1).reshape(bs, ch, 1, 1)
    return ((x.astype(jnp.float32) - x_mean) / x_std * y_std + y_mean).astype(x.dtype)


if __name__ == "__main__":
    key = jax.random.PRNGKey(0)
    kx, ky, ka, kb = jax.random.split(key, 4)

    # Fused fast path: unequal x/y spatial sizes, y's 144 lanes exercise the
    # "no padding, full-extent last block dim" BlockSpecs.
    x = jax.random.normal(kx, (2, 4, 16, 16), dtype=jnp.float32) * 2.0 + 0.5
    y = jax.random.normal(ky, (2, 4, 12, 12), dtype=jnp.float32) * 3.0 - 1.0
    out = jax.block_until_ready(adain(x, y, eps=1e-5))
    ref = adain_reference(x, y, eps=1e-5)
    assert out.shape == x.shape
    assert jnp.allclose(out, ref, atol=1e-4, rtol=1e-4), "fused path mismatch"

    # Spatial-chunked fallback, forced with a tiny VMEM budget so shapes stay
    # small (exercises chunk masking + ragged last chunk).
    xa = jax.random.normal(ka, (1, 8, 44, 44), dtype=jnp.float32) + 3.0
    yb = jax.random.normal(kb, (1, 8, 20, 20), dtype=jnp.float32) * 0.5 - 2.0
    out2 = jax.block_until_ready(adain(xa, yb, eps=1e-5, vmem_budget_bytes=96 * 1024))
    ref2 = adain_reference(xa, yb, eps=1e-5)
    assert out2.shape == xa.shape
    assert jnp.allclose(out2, ref2, atol=1e-4, rtol=1e-4), "chunked path mismatch"

    print("KERNEL_OK")
</pallas_src>

<mosaic_0001>
module attributes {stable_mosaic.version = 11 : i64} {
  func.func @_adain_fused_kernel(%arg0: i32, %arg1: memref<8x256xf32, #tpu.memory_space<vmem>>, %arg2: memref<8x144xf32, #tpu.memory_space<vmem>>, %arg3: memref<8x256xf32, #tpu.memory_space<vmem>>) attributes {dimension_semantics = [#tpu.dimension_semantics<parallel>], iteration_bounds = array<i64: 1>, scalar_prefetch = 0 : i64, scratch_operands = 0 : i64, tpu.core_type = #tpu.core_type<tc>, window_params = [{transform_indices = @transform_0, window_bounds = array<i64: 8, 256>}, {transform_indices = @transform_1, window_bounds = array<i64: 8, 144>}, {transform_indices = @transform_2, window_bounds = array<i64: 8, 256>}]} {
    %c0 = arith.constant 0 : index
    %c0_0 = arith.constant 0 : index
    %0 = vector.load %arg1[%c0, %c0_0] : memref<8x256xf32, #tpu.memory_space<vmem>>, vector<8x256xf32>
    %cst = arith.constant dense<0.000000e+00> : vector<8xf32>
    %1 = vector.multi_reduction <add>, %0, %cst [1] : vector<8x256xf32> to vector<8xf32>
    %2 = vector.shape_cast %1 : vector<8xf32> to vector<8x1xf32>
    %cst_1 = arith.constant 3.906250e-03 : f32
    %3 = vector.broadcast %cst_1 : f32 to vector<8x1xf32>
    %4 = arith.mulf %2, %3 : vector<8x1xf32>
    %c0_2 = arith.constant 0 : index
    %c0_3 = arith.constant 0 : index
    %5 = vector.load %arg2[%c0_2, %c0_3] : memref<8x144xf32, #tpu.memory_space<vmem>>, vector<8x144xf32>
    %cst_4 = arith.constant dense<0.000000e+00> : vector<8xf32>
    %6 = vector.multi_reduction <add>, %5, %cst_4 [1] : vector<8x144xf32> to vector<8xf32>
    %7 = vector.shape_cast %6 : vector<8xf32> to vector<8x1xf32>
    %cst_5 = arith.constant 0.0069444445 : f32
    %8 = vector.broadcast %cst_5 : f32 to vector<8x1xf32>
    %9 = arith.mulf %7, %8 : vector<8x1xf32>
    %c0_6 = arith.constant 0 : index
    %c0_7 = arith.constant 0 : index
    %10 = vector.load %arg1[%c0_6, %c0_7] : memref<8x256xf32, #tpu.memory_space<vmem>>, vector<8x256xf32>
    %11 = vector.broadcast %4 : vector<8x1xf32> to vector<8x256xf32>
    %12 = arith.subf %10, %11 : vector<8x256xf32>
    %c0_8 = arith.constant 0 : index
    %c0_9 = arith.constant 0 : index
    %13 = vector.load %arg2[%c0_8, %c0_9] : memref<8x144xf32, #tpu.memory_space<vmem>>, vector<8x144xf32>
    %14 = vector.broadcast %9 : vector<8x1xf32> to vector<8x144xf32>
    %15 = arith.subf %13, %14 : vector<8x144xf32>
    %16 = arith.mulf %12, %12 : vector<8x256xf32>
    %cst_10 = arith.constant dense<0.000000e+00> : vector<8xf32>
    %17 = vector.multi_reduction <add>, %16, %cst_10 [1] : vector<8x256xf32> to vector<8xf32>
    %18 = vector.shape_cast %17 : vector<8xf32> to vector<8x1xf32>
    %cst_11 = arith.constant 2.550000e+02 : f32
    %19 = vector.broadcast %cst_11 : f32 to vector<8x1xf32>
    %20 = arith.divf %18, %19 : vector<8x1xf32>
    %21 = arith.mulf %15, %15 : vector<8x144xf32>
    %cst_12 = arith.constant dense<0.000000e+00> : vector<8xf32>
    %22 = vector.multi_reduction <add>, %21, %cst_12 [1] : vector<8x144xf32> to vector<8xf32>
    %23 = vector.shape_cast %22 : vector<8xf32> to vector<8x1xf32>
    %cst_13 = arith.constant 1.430000e+02 : f32
    %24 = vector.broadcast %cst_13 : f32 to vector<8x1xf32>
    %25 = arith.divf %23, %24 : vector<8x1xf32>
    %cst_14 = arith.constant 9.99999974E-6 : f32
    %26 = vector.broadcast %cst_14 : f32 to vector<8x1xf32>
    %27 = arith.addf %25, %26 : vector<8x1xf32>
    %cst_15 = arith.constant 9.99999974E-6 : f32
    %28 = vector.broadcast %cst_15 : f32 to vector<8x1xf32>
    %29 = arith.addf %20, %28 : vector<8x1xf32>
    %30 = arith.divf %27, %29 : vector<8x1xf32>
    %31 = math.sqrt %30 : vector<8x1xf32>
    %32 = arith.mulf %4, %31 : vector<8x1xf32>
    %33 = arith.subf %9, %32 : vector<8x1xf32>
    %c0_16 = arith.constant 0 : index
    %c0_17 = arith.constant 0 : index
    %34 = vector.load %arg1[%c0_16, %c0_17] : memref<8x256xf32, #tpu.memory_space<vmem>>, vector<8x256xf32>
    %35 = vector.broadcast %31 : vector<8x1xf32> to vector<8x256xf32>
    %36 = arith.mulf %34, %35 : vector<8x256xf32>
    %37 = vector.broadcast %33 : vector<8x1xf32> to vector<8x256xf32>
    %38 = arith.addf %36, %37 : vector<8x256xf32>
    %c0_18 = arith.constant 0 : index
    %c0_19 = arith.constant 0 : index
    %39 = vector.load %arg3[%c0_18, %c0_19] : memref<8x256xf32, #tpu.memory_space<vmem>>, vector<8x256xf32>
    tpu.vector_store %arg3[%c0_18, %c0_19], %38 {strides = array<i32>} : memref<8x256xf32, #tpu.memory_space<vmem>>, vector<8x256xf32>,
    return
  }
  func.func @transform_0(%arg0: i32) -> (i32, i32) {
    %c0_i32 = arith.constant 0 : i32
    %c0_i32_0 = arith.constant 0 : i32
    return %arg0, %c0_i32 : i32, i32
  }
  func.func @transform_1(%arg0: i32) -> (i32, i32) {
    %c0_i32 = arith.constant 0 : i32
    %c0_i32_0 = arith.constant 0 : i32
    return %arg0, %c0_i32 : i32, i32
  }
  func.func @transform_2(%arg0: i32) -> (i32, i32) {
    %c0_i32 = arith.constant 0 : i32
    %c0_i32_0 = arith.constant 0 : i32
    return %arg0, %c0_i32 : i32, i32
  }
}

</mosaic_0001>

<bundles_post_ra>
// kernel: tpu_custom_call.1
= control target key start
LH: loop header
LB: loop body
LE: loop exit
PB: predicated region body
PF: predicated region fallthrough
CT: control target
= control target key end

     0   :  { %7 = vsyncpa [#allocation3], 0  ;;  %s239_s0 = inlined_call_operand.hbm [shape: f32[8,256], index: 0, kind: input, shape index: {}]   ;;  %s240_s1 = inlined_call_operand.hbm [shape: f32[8,144], index: 1, kind: input, shape index: {}]   ;;  %s241_s2 = inlined_call_operand.hbm [shape: f32[8,256], index: 2, kind: output, shape index: {}]  }
   0x1   :  { %8 = vsyncpa [#allocation6], 0 }
   0x2   :  { %9 = vsyncpa [#allocation4], 0  ;;  %s183_s9 = smov [#allocation2]   ;;  %s184_s11 = smov [#allocation5]  }
   0x3   :  { %s16_s10 = sshll.u32 %s183_s9, 4  ;;  %s26_s12 = sshll.u32 %s184_s11, 4  ;;  %s17_s10 = int_to_ptr.vmem [resolvable:$true] %s16_s10  ;;  %s27_s12 = int_to_ptr.vmem [resolvable:$true] %s26_s12 }
   0x4   :  { %s111_s15 = scalar_lea.hbm %s239_s0, 256 }
   0x5   :  { %p112_p0 = scmp.ne.s32.totalorder %s239_s0, %s111_s15  ;;  %p115_p1 = scmp.lt.u32.totalorder %s111_s15, %s239_s0 }
   0x7   :  { %p117_p2 = pnand %p115_p1, %p112_p0 }
   0x9   :  { %120 = shalt.err (!%p117_p2)
}
   0xa   :  { %s121_s20 = scalar_lea.vmem %s17_s10, 256  ;;  %p126_p4 = scmp.lt.s32.totalorder %s17_s10, %s17_s10 }
   0xb   :  { %p122_p3 = scmp.ne.s32.totalorder %s17_s10, %s121_s20  ;;  %p127_p5 = scmp.lt.s32.totalorder %s121_s20, %s121_s20 }
   0xd   :  { %p128_p6 = por %p127_p5, %p126_p4 }
   0xf   :  { %p129_p7 = pnand %p128_p6, %p122_p3 }
  0x11   :  { %132 = shalt.err (!%p129_p7)
}
  0x12   :  { %19 = dma.hbm_to_vmem [thread:$0]  %s239_s0, 256, %s17_s10, [#allocation3]  }
  0x13   :  { %s133_s25 = scalar_lea.hbm %s240_s1, 256 }
  0x14   :  { %p134_p8 = scmp.ne.s32.totalorder %s240_s1, %s133_s25  ;;  %p137_p9 = scmp.lt.u32.totalorder %s133_s25, %s240_s1 }
  0x16   :  { %p139_p10 = pnand %p137_p9, %p134_p8 }
  0x18   :  { %142 = shalt.err (!%p139_p10)
}
  0x19   :  { %s143_s30 = scalar_lea.vmem %s27_s12, 256  ;;  %p148_p12 = scmp.lt.s32.totalorder %s27_s12, %s27_s12 }
  0x1a   :  { %p144_p11 = scmp.ne.s32.totalorder %s27_s12, %s143_s30  ;;  %p149_p13 = scmp.lt.s32.totalorder %s143_s30, %s143_s30 }
  0x1c   :  { %p150_p0 = por %p149_p13, %p148_p12 }
  0x1e   :  { %p151_p1 = pnand %p150_p0, %p144_p11 }
  0x20   :  { %154 = shalt.err (!%p151_p1)
}
  0x21   :  { %29 = dma.hbm_to_vmem [thread:$0]  %s240_s1, 256, %s27_s12, [#allocation6]  }
  0x22   :  { %177 = dma.done.wait [#allocation3], 256  }
  0x23   :  { %178 = vsyncadd [#allocation3], 4294967040 }
  0x24   :  { %179 = dma.done.wait [#allocation6], 256  }
  0x25   :  { %180 = vsyncadd [#allocation6], 4294967040  ;;  %vm44_vm0 = vcmask 130048   ;;  %v36_v0 = vld [vmem:[#allocation2] sm:$0xff]  ;;  %v37_v1 = vld [vmem:[#allocation2 + $0x8] sm:$0xff]  ;;  %s185_s1 = smov [#allocation7]  }
  0x26   :  { %v42_v2 = vld [vmem:[#allocation5] sm:$0xff]  ;;  %v38_v3 = vadd.f32 %v37_v1, %v36_v0  ;;  %v43_v4 = vld [vmem:[#allocation5 + $0x8] sm:$0xff]  ;;  %s94_s4 = sshll.u32 %s185_s1, 4  ;;  %s95_s4 = int_to_ptr.vmem [resolvable:$true] %s94_s4 }
  0x27   :  { %v45_v5 = vsel %vm44_vm0, %v43_v4, 0.0  ;;  %s155_s5 = scalar_lea.vmem %s95_s4, 256  ;;  %p160_p3 = scmp.lt.s32.totalorder %s95_s4, %s95_s4 }
  0x28   :  { %39 = vadd.xlane.f32.xlu0 %v38_v3  ;;  %v46_v6 = vadd.f32 %v45_v5, %v42_v2  ;;  %p156_p2 = scmp.ne.s32.totalorder %s95_s4, %s155_s5  ;;  %p161_p4 = scmp.lt.s32.totalorder %s155_s5, %s155_s5 }
  0x2a   :  { %p162_p5 = por %p161_p4, %p160_p3 }
  0x2c   :  { %47 = vadd.xlane.f32.xlu0 %v46_v6  ;;  %p163_p6 = pnand %p162_p5, %p156_p2 }
  0xb5   :  { %v40_v7 = vpop.xlane.xlu0 %39 }
  0xb6   :  { %v41_v8 = vmul.f32 0.00390625, %v40_v7 }
  0xb8   :  { %v50_v9 = vsub.f32 %v36_v0, %v41_v8  ;;  %v51_v10 = vsub.f32 %v37_v1, %v41_v8 }
  0xb9   :  { %v48_v11 = vpop.xlane.xlu0 %47 }
  0xba   :  { %v54_v12 = vmul.f32 %v50_v9, %v50_v9  ;;  %v55_v13 = vmul.f32 %v51_v10, %v51_v10  ;;  %v49_v14 = vmul.f32 0.0069444445, %v48_v11 }
  0xbc   :  { %v56_v15 = vadd.f32 %v55_v13, %v54_v12  ;;  %v53_v16 = vsub.f32 %v43_v4, %v49_v14  ;;  %v52_v17 = vsub.f32 %v42_v2, %v49_v14 }
  0xbe   :  { %57 = vadd.xlane.f32.xlu1 %v56_v15  ;;  %v61_v18 = vmul.f32 %v52_v17, %v52_v17  ;;  %v62_v19 = vmul.f32 %v53_v16, %v53_v16 }
  0xc0   :  { %v63_v20 = vsel %vm44_vm0, %v62_v19, 0.0 }
  0xc1   :  { %v64_v21 = vadd.f32 %v63_v20, %v61_v18 }
  0xc3   :  { %65 = vadd.xlane.f32.xlu1 %v64_v21 }
 0x14b   :  { %v58_v22 = vpop.xlane.xlu1 %57 }
 0x14c   :  { %v60_v23 = vmul.f32 0.003921569, %v58_v22 }
 0x14e   :  { %v70_v24 = vadd.f32 1e-05, %v60_v23 }
 0x150   :  { %107 = vrcp.f32 %v70_v24  ;;  %v66_v25 = vpop.xlane.xlu1 %65 }
 0x151   :  { %v68_v26 = vmul.f32 0.006993007, %v66_v25 }
 0x153   :  { %v69_v27 = vadd.f32 1e-05, %v68_v26 }
 0x15a   :  { %v108_v28 = vpop.eup %107 }
 0x15b   :  { %v72_v29 = vmul.f32 %v108_v28, %v69_v27 }
 0x15d   :  { %109 = vrsqrt.f32 %v72_v29  ;;  %vm75_vm1 = vcmp.eq.f32.partialorder %v72_v29, inf  ;;  %v78_v32 = vand.u32 2147483648, %v72_v29  ;;  %vm77_vm2 = vcmp.eq.f32.partialorder %v72_v29, 0.0 }
 0x167   :  { %v110_v30 = vpop.eup %109 }
 0x168   :  { %v74_v31 = vmul.f32 %v110_v30, %v72_v29 }
 0x16a   :  { %v76_v33 = vsel %vm75_vm1, %v72_v29, %v74_v31 }
 0x16b   :  { %v79_v34 = vsel %vm77_vm2, %v78_v32, %v76_v33 }
 0x16c   :  { %v80_v35 = vmul.f32 %v79_v34, %v41_v8  ;;  %v82_v37 = vmul.f32 %v79_v34, %v36_v0  ;;  %v83_v38 = vmul.f32 %v79_v34, %v37_v1 }
 0x16e   :  { %v81_v36 = vsub.f32 %v49_v14, %v80_v35 }
 0x170   :  { %v84_v39 = vadd.f32 %v82_v37, %v81_v36  ;;  %v85_v40 = vadd.f32 %v83_v38, %v81_v36 }
 0x172   :  { %86 = vst [vmem:[#allocation7] sm:$0xff] %v84_v39  ;;  %87 = vst [vmem:[#allocation7 + $0x8] sm:$0xff] %v85_v40 }
 0x173   :  { %166 = shalt.err (!%p163_p6)
}
 0x174   :  { %s167_s8 = scalar_lea.hbm %s241_s2, 256 }
 0x175   :  { %p168_p7 = scmp.ne.s32.totalorder %s241_s2, %s167_s8  ;;  %p171_p8 = scmp.lt.u32.totalorder %s167_s8, %s241_s2 }
 0x177   :  { %p173_p9 = pnand %p171_p8, %p168_p7 }
 0x179   :  { %176 = shalt.err (!%p173_p9)
}
 0x17a   :  { %97 = dma.vmem_to_hbm [thread:$0]  %s95_s4, 256, %s241_s2, [#allocation4]  }
 0x17b   :  { %181 = dma.done.wait [#allocation4], 256  }
 0x17c   :  { %182 = vsyncadd [#allocation4], 4294967040 }
 0x17d   :  { %101 = vsyncpa [#allocation3], 1 }
 0x17e   :  { %102 = vsyncpa [#allocation6], 1 }
 0x17f   :  { %103 = vsyncpa [#allocation4], 1 }

</bundles_post_ra>
